<compile_context>
chip_gen: v6e
topology: v6e:2x2x1
jax: 0.10.0
libtpu: 0.0.40
codegen_flags: <defaults>
</compile_context>

<pallas_src>
import functools

import jax
import jax.numpy as jnp
from jax.experimental import pallas as pl
from jax.experimental.pallas import tpu as pltpu

_LANE = 128
_SUBLANE = 8


def _round_up(n, m):
    return ((n + m - 1) // m) * m


def _cdiv(a, b):
    return -(-a // b)


def _mlp_kernel(n_layers, out_dim, x_ref, *refs):
    """Full padded MLP forward for one (TB, 128) batch tile.

    refs = (w1, b1, ..., wL, bL, out_ref); all tiles live in VMEM.
    Hidden layers: ReLU(h @ W + b); final layer: Sigmoid(h @ W + b), written
    transposed so the batch dim lands in the lane dimension of the output.
    Padded lanes stay exactly zero through every hidden layer (zero-padded W
    columns and biases), so the valid output rows are exact.
    """
    out_ref = refs[-1]
    param_refs = refs[:-1]
    h = x_ref[...]                                            # bf16 (tb, in_pad)
    for i in range(n_layers):
        w = param_refs[2 * i][...]                            # bf16
        b = param_refs[2 * i + 1][...]                        # f32
        acc = jnp.dot(h, w, preferred_element_type=jnp.float32) + b
        if i < n_layers - 1:
            # ReLU in f32 on the VPU, recast to bf16 for the next MXU pass.
            h = jnp.maximum(acc, 0.0).astype(jnp.bfloat16)
        else:
            # Lane-dense output: XLU transpose (tb, out_pad) -> (out_pad, tb),
            # keep only the valid rows, sigmoid them on the EUP (exp + approx
            # reciprocal), and store a (out_dim, tb) block -> unmasked vst.
            acc_t = jnp.transpose(acc)                        # (out_pad, tb) f32
            rows = acc_t[0:out_dim, :]                        # (out_dim, tb)
            rows = pl.reciprocal(1.0 + jnp.exp(-rows), approx=True)
            out_ref[...] = rows.astype(out_ref.dtype)


def mlp_forward(x, params, *, block_batch=2048):
    """params: list of (W, b) with W of shape (in, out), b of shape (1, out).

    Returns a (batch, out_dim) float32 array; out_dim must be <= 128 (the
    original module has out_dim == 1).
    """
    n_layers = len(params)
    batch, in_dim = x.shape
    out_dim = params[-1][0].shape[1]
    assert out_dim <= _LANE, "lane-dense output path assumes out_dim <= 128"

    # --- pad all feature dims to 128 lanes; weights -> bf16, biases stay f32.
    in_pad = _round_up(in_dim, _LANE)
    flat = []
    for w, b in params:
        di, do = w.shape
        di_p, do_p = _round_up(di, _LANE), _round_up(do, _LANE)
        w_p = jnp.zeros((di_p, do_p), jnp.float32).at[:di, :do].set(w)
        b_p = jnp.zeros((1, do_p), jnp.float32).at[:, :do].set(b.reshape(1, do))
        flat.extend([w_p.astype(jnp.bfloat16), b_p])

    # --- batch tiling: >= 2 grid steps (v7x megacore), TB multiple of 128
    #     (lane-dense output block), padding bounded by 128*n_steps rows.
    rows = _round_up(batch, _SUBLANE)
    n_steps = max(2, _cdiv(rows, block_batch))
    tb = _round_up(_cdiv(rows, n_steps), _LANE)
    batch_pad = n_steps * tb
    x_p = (jnp.zeros((batch_pad, in_pad), jnp.float32)
           .at[:batch, :in_dim].set(x)).astype(jnp.bfloat16)
    grid = (n_steps,)

    in_specs = [pl.BlockSpec((tb, in_pad), lambda i: (i, 0))]
    # Weights/biases: full-array, constant-index, single-buffered -> resident
    # in VMEM once, no re-DMA across grid steps and no 2x buffer allocation.
    in_specs += [
        pl.BlockSpec(a.shape, lambda i: (0, 0), pipeline_mode=pl.Buffered(1))
        for a in flat
    ]
    # Lane-dense output block: batch in the lane dimension.
    out_specs = pl.BlockSpec((out_dim, tb), lambda i: (0, i))

    flops = 2 * batch_pad * sum(w.shape[0] * w.shape[1] for w in flat[0::2])
    bytes_accessed = (x_p.size * 2                                   # bf16 x
                      + sum(int(a.size) * a.dtype.itemsize for a in flat)
                      + out_dim * batch_pad * 4)                     # f32 out
    cost = pl.CostEstimate(flops=flops,
                           transcendentals=2 * out_dim * batch_pad,  # exp+recip
                           bytes_accessed=bytes_accessed)

    kernel = functools.partial(_mlp_kernel, n_layers, out_dim)

    out_p = pl.pallas_call(
        kernel,
        out_shape=jax.ShapeDtypeStruct((out_dim, batch_pad), jnp.float32),
        grid=grid,
        in_specs=in_specs,
        out_specs=out_specs,
        compiler_params=pltpu.CompilerParams(
            dimension_semantics=("parallel",)),
        cost_estimate=cost,
    )(x_p, *flat)

    # (out_dim, batch_pad) -> (batch, out_dim); padded rows never consumed.
    return jnp.transpose(out_p[:, :batch])


def init_params(key, hidden_layer, unit, input_node=30, output_node=1):
    """Deterministic synthetic init mirroring the torch module's layer shapes."""
    dims = [input_node] + [unit] * (hidden_layer - 1) + [output_node]
    params = []
    for i in range(len(dims) - 1):
        key, kw, kb = jax.random.split(key, 3)
        bound = 1.0 / jnp.sqrt(dims[i])
        w = jax.random.uniform(kw, (dims[i], dims[i + 1]), jnp.float32,
                               minval=-bound, maxval=bound)
        b = jax.random.uniform(kb, (1, dims[i + 1]), jnp.float32,
                               minval=-bound, maxval=bound)
        params.append((w, b))
    return params


if __name__ == "__main__":
    # Network(hidden_layer=3, unit=32): 30 -> 32 -> 32 -> 1, ReLU x2, Sigmoid.
    hidden_layer, unit = 3, 32
    batch, input_node = 8, 30

    key = jax.random.PRNGKey(0)
    key, kx = jax.random.split(key)
    x = jax.random.normal(kx, (batch, input_node), dtype=jnp.float32)
    params = init_params(key, hidden_layer, unit, input_node=input_node)

    out = mlp_forward(x, params)
    out = jax.block_until_ready(out)

    # Pure-JAX reference applying the SAME bf16 quantization of x / W as the
    # kernel (f32 accumulation, f32 elementwise, exact sigmoid). The remaining
    # differences are the EUP approximate reciprocal (~1e-4 rel. error) and
    # MXU accumulation order, both well inside the tolerance.
    h = x.astype(jnp.bfloat16)
    ref = None
    for i, (w, b) in enumerate(params):
        acc = jnp.dot(h, w.astype(jnp.bfloat16),
                      preferred_element_type=jnp.float32) + b
        if i < len(params) - 1:
            h = jnp.maximum(acc, 0.0).astype(jnp.bfloat16)
        else:
            ref = jax.nn.sigmoid(acc)

    assert out.shape == (batch, 1)
    assert jnp.allclose(out, ref, atol=2e-3, rtol=2e-3)

    print("KERNEL_OK")
</pallas_src>

<mosaic_0001>
module attributes {stable_mosaic.version = 11 : i64} {
  func.func @_mlp_kernel(%arg0: i32, %arg1: memref<128x128xbf16, #tpu.memory_space<vmem>>, %arg2: memref<128x128xbf16, #tpu.memory_space<vmem>>, %arg3: memref<1x128xf32, #tpu.memory_space<vmem>>, %arg4: memref<128x128xbf16, #tpu.memory_space<vmem>>, %arg5: memref<1x128xf32, #tpu.memory_space<vmem>>, %arg6: memref<128x128xbf16, #tpu.memory_space<vmem>>, %arg7: memref<1x128xf32, #tpu.memory_space<vmem>>, %arg8: memref<1x128xf32, #tpu.memory_space<vmem>>) attributes {dimension_semantics = [#tpu.dimension_semantics<parallel>], iteration_bounds = array<i64: 2>, scalar_prefetch = 0 : i64, scratch_operands = 0 : i64, tpu.core_type = #tpu.core_type<tc>, window_params = [{transform_indices = @transform_0, window_bounds = array<i64: 128, 128>}, {pipeline_mode = #tpu.pipeline_mode<synchronous>, transform_indices = @transform_1, window_bounds = array<i64: 128, 128>}, {pipeline_mode = #tpu.pipeline_mode<synchronous>, transform_indices = @transform_2, window_bounds = array<i64: 1, 128>}, {pipeline_mode = #tpu.pipeline_mode<synchronous>, transform_indices = @transform_3, window_bounds = array<i64: 128, 128>}, {pipeline_mode = #tpu.pipeline_mode<synchronous>, transform_indices = @transform_4, window_bounds = array<i64: 1, 128>}, {pipeline_mode = #tpu.pipeline_mode<synchronous>, transform_indices = @transform_5, window_bounds = array<i64: 128, 128>}, {pipeline_mode = #tpu.pipeline_mode<synchronous>, transform_indices = @transform_6, window_bounds = array<i64: 1, 128>}, {transform_indices = @transform_7, window_bounds = array<i64: 1, 128>}]} {
    %c0 = arith.constant 0 : index
    %c0_0 = arith.constant 0 : index
    %0 = vector.load %arg1[%c0, %c0_0] : memref<128x128xbf16, #tpu.memory_space<vmem>>, vector<128x128xbf16>
    %c0_1 = arith.constant 0 : index
    %c0_2 = arith.constant 0 : index
    %1 = vector.load %arg2[%c0_1, %c0_2] : memref<128x128xbf16, #tpu.memory_space<vmem>>, vector<128x128xbf16>
    %c0_3 = arith.constant 0 : index
    %c0_4 = arith.constant 0 : index
    %2 = vector.load %arg3[%c0_3, %c0_4] : memref<1x128xf32, #tpu.memory_space<vmem>>, vector<1x128xf32>
    %cst = arith.constant dense<0.000000e+00> : vector<128x128xf32>
    %3 = tpu.matmul %0, %1, %cst {dimension_numbers = #tpu.dot_dimension_numbers<[1], [0], [0], [1], [0, 0, 1, 1], [], []>} : vector<128x128xbf16>, vector<128x128xbf16>, vector<128x128xf32> -> vector<128x128xf32>
    %4 = vector.broadcast %2 : vector<1x128xf32> to vector<128x128xf32>
    %5 = arith.addf %3, %4 : vector<128x128xf32>
    %cst_5 = arith.constant 0.000000e+00 : f32
    %6 = vector.broadcast %cst_5 : f32 to vector<128x128xf32>
    %7 = arith.maximumf %5, %6 : vector<128x128xf32>
    %8 = arith.truncf %7 : vector<128x128xf32> to vector<128x128xbf16>
    %c0_6 = arith.constant 0 : index
    %c0_7 = arith.constant 0 : index
    %9 = vector.load %arg4[%c0_6, %c0_7] : memref<128x128xbf16, #tpu.memory_space<vmem>>, vector<128x128xbf16>
    %c0_8 = arith.constant 0 : index
    %c0_9 = arith.constant 0 : index
    %10 = vector.load %arg5[%c0_8, %c0_9] : memref<1x128xf32, #tpu.memory_space<vmem>>, vector<1x128xf32>
    %cst_10 = arith.constant dense<0.000000e+00> : vector<128x128xf32>
    %11 = tpu.matmul %8, %9, %cst_10 {dimension_numbers = #tpu.dot_dimension_numbers<[1], [0], [0], [1], [0, 0, 1, 1], [], []>} : vector<128x128xbf16>, vector<128x128xbf16>, vector<128x128xf32> -> vector<128x128xf32>
    %12 = vector.broadcast %10 : vector<1x128xf32> to vector<128x128xf32>
    %13 = arith.addf %11, %12 : vector<128x128xf32>
    %cst_11 = arith.constant 0.000000e+00 : f32
    %14 = vector.broadcast %cst_11 : f32 to vector<128x128xf32>
    %15 = arith.maximumf %13, %14 : vector<128x128xf32>
    %16 = arith.truncf %15 : vector<128x128xf32> to vector<128x128xbf16>
    %c0_12 = arith.constant 0 : index
    %c0_13 = arith.constant 0 : index
    %17 = vector.load %arg6[%c0_12, %c0_13] : memref<128x128xbf16, #tpu.memory_space<vmem>>, vector<128x128xbf16>
    %c0_14 = arith.constant 0 : index
    %c0_15 = arith.constant 0 : index
    %18 = vector.load %arg7[%c0_14, %c0_15] : memref<1x128xf32, #tpu.memory_space<vmem>>, vector<1x128xf32>
    %cst_16 = arith.constant dense<0.000000e+00> : vector<128x128xf32>
    %19 = tpu.matmul %16, %17, %cst_16 {dimension_numbers = #tpu.dot_dimension_numbers<[1], [0], [0], [1], [0, 0, 1, 1], [], []>} : vector<128x128xbf16>, vector<128x128xbf16>, vector<128x128xf32> -> vector<128x128xf32>
    %20 = vector.broadcast %18 : vector<1x128xf32> to vector<128x128xf32>
    %21 = arith.addf %19, %20 : vector<128x128xf32>
    %22 = tpu.transpose %21, [1, 0] : vector<128x128xf32> -> vector<128x128xf32>
    %23 = vector.extract_strided_slice %22 {offsets = [0, 0], sizes = [1, 128], strides = [1, 1]} : vector<128x128xf32> to vector<1x128xf32>
    %cst_17 = arith.constant 0.000000e+00 : f32
    %24 = vector.broadcast %cst_17 : f32 to vector<1x128xf32>
    %25 = arith.subf %24, %23 : vector<1x128xf32>
    %26 = math.exp %25 : vector<1x128xf32>
    %cst_18 = arith.constant 1.000000e+00 : f32
    %27 = vector.broadcast %cst_18 : f32 to vector<1x128xf32>
    %28 = arith.addf %27, %26 : vector<1x128xf32>
    %29 = tpu.reciprocal %28 {approx = true} : vector<1x128xf32> -> vector<1x128xf32>
    %c0_19 = arith.constant 0 : index
    %c0_20 = arith.constant 0 : index
    %30 = vector.load %arg8[%c0_19, %c0_20] : memref<1x128xf32, #tpu.memory_space<vmem>>, vector<1x128xf32>
    tpu.vector_store %arg8[%c0_19, %c0_20], %29 {strides = array<i32>} : memref<1x128xf32, #tpu.memory_space<vmem>>, vector<1x128xf32>,
    return
  }
  func.func @transform_0(%arg0: i32) -> (i32, i32) {
    %c0_i32 = arith.constant 0 : i32
    %c0_i32_0 = arith.constant 0 : i32
    return %arg0, %c0_i32 : i32, i32
  }
  func.func @transform_1(%arg0: i32) -> (i32, i32) {
    %c0_i32 = arith.constant 0 : i32
    %c0_i32_0 = arith.constant 0 : i32
    %c0_i32_1 = arith.constant 0 : i32
    return %c0_i32, %c0_i32_0 : i32, i32
  }
  func.func @transform_2(%arg0: i32) -> (i32, i32) {
    %c0_i32 = arith.constant 0 : i32
    %c0_i32_0 = arith.constant 0 : i32
    %c0_i32_1 = arith.constant 0 : i32
    return %c0_i32, %c0_i32_0 : i32, i32
  }
  func.func @transform_3(%arg0: i32) -> (i32, i32) {
    %c0_i32 = arith.constant 0 : i32
    %c0_i32_0 = arith.constant 0 : i32
    %c0_i32_1 = arith.constant 0 : i32
    return %c0_i32, %c0_i32_0 : i32, i32
  }
  func.func @transform_4(%arg0: i32) -> (i32, i32) {
    %c0_i32 = arith.constant 0 : i32
    %c0_i32_0 = arith.constant 0 : i32
    %c0_i32_1 = arith.constant 0 : i32
    return %c0_i32, %c0_i32_0 : i32, i32
  }
  func.func @transform_5(%arg0: i32) -> (i32, i32) {
    %c0_i32 = arith.constant 0 : i32
    %c0_i32_0 = arith.constant 0 : i32
    %c0_i32_1 = arith.constant 0 : i32
    return %c0_i32, %c0_i32_0 : i32, i32
  }
  func.func @transform_6(%arg0: i32) -> (i32, i32) {
    %c0_i32 = arith.constant 0 : i32
    %c0_i32_0 = arith.constant 0 : i32
    %c0_i32_1 = arith.constant 0 : i32
    return %c0_i32, %c0_i32_0 : i32, i32
  }
  func.func @transform_7(%arg0: i32) -> (i32, i32) {
    %c0_i32 = arith.constant 0 : i32
    %c0_i32_0 = arith.constant 0 : i32
    return %c0_i32, %arg0 : i32, i32
  }
}

</mosaic_0001>

<bundles_post_ra>
// kernel: tpu_custom_call.1
= control target key start
LH: loop header
LB: loop body
LE: loop exit
PB: predicated region body
PF: predicated region fallthrough
CT: control target
= control target key end

     0   :  { %s1913_s0 = inlined_call_operand.hbm [shape: bf16[256,128], index: 0, kind: input, shape index: {}]   ;;  %s1914_s1 = inlined_call_operand.hbm [shape: bf16[128,128], index: 1, kind: input, shape index: {}]   ;;  %s1915_s2 = inlined_call_operand.vmem [shape: f32[1,128], index: 2, kind: input, shape index: {}]   ;;  %s1916_s3 = inlined_call_operand.hbm [shape: bf16[128,128], index: 3, kind: input, shape index: {}]   ;;  %s1917_s4 = inlined_call_operand.vmem [shape: f32[1,128], index: 4, kind: input, shape index: {}]   ;;  %s1918_s5 = inlined_call_operand.hbm [shape: bf16[128,128], index: 5, kind: input, shape index: {}]   ;;  %s1919_s6 = inlined_call_operand.vmem [shape: f32[1,128], index: 6, kind: input, shape index: {}]   ;;  %s1920_s7 = inlined_call_operand.hbm [shape: f32[1,256], index: 7, kind: output, shape index: {}]  }
   0x1   :  { %1927 = sst [smem:[#allocation15_spill]] %s1914_s1 }
   0x2   :  { %12 = vsyncpa [#allocation3], 0 }
   0x3   :  { %14 = vsyncpa [#allocation3 + $0x1], 0 }
   0x4   :  { %15 = vsyncpa [#allocation6], 0 }
   0x5   :  { %16 = vsyncpa [#allocation9], 0 }
   0x6   :  { %17 = vsyncpa [#allocation4], 0 }
   0x7   :  { %19 = vsyncpa [#allocation4 + $0x1], 0  ;;  %s1659_s24 = smov 0   ;;  %s1661_s25 = smov 0  }
   0x8   :  { %s1663_s26 = smov 0   ;;  %s1665_s27 = smov 0  }
   0x9 LB: > { %s1680_s28 = sadd.s32 4294967295, %s1610_s27   ;;  %s1104_s29 = sadd.s32 4294967294, %s1610_s27   ;;  %s1610_s27 = sphi %s1665_s27, %s1949_s27   ;;  %s1606_s26 = sphi %s1663_s26, %s1948_s26   ;;  %s1602_s25 = sphi %s1661_s25, %s1947_s25   ;;  %s1598_s24 = sphi %s1659_s24, %s1946_s24  }
   0xa   : > { %p45_p0 = scmp.ne.s32.totalorder %s1602_s25, %s1598_s24  ;;  %p1921_p1 = scmp.eq.s32.totalorder %s1680_s28, 0 }
   0xb   : > { %p195_p2 = scmp.eq.s32.totalorder %s1680_s28, 1  ;;  %p201_p3 = scmp.eq.s32.totalorder %s1104_s29, 1 }
   0xc   : > { %p1689_p4 = por %p1921_p1, %p45_p0  ;;  %p1105_p5 = scmp.ge.s32.totalorder %s1610_s27, 1 }
   0xd   : > { %p1694_p6 = por %p201_p3, %p45_p0  ;;  %p208_p7 = scmp.lt.s32.totalorder %s1610_s27, 3 }
   0xe   : > { %s1928_s30 = scalar_select %p1689_p4, 1, 0 }
   0xf   : > { %s1929_s8 = scalar_select %p1694_p6, 1, 0 }
  0x10   : > { %p1699_p8 = pnand %p1105_p5, %p208_p7  ;;  %s1612_s10 = smov [#allocation5]  }
  0x11   : > { %s220_s11 = sshll.u32 %s1612_s10, 4  ;;  %s1613_s13 = smov [#allocation7]   ;;  %s221_s11 = int_to_ptr.vmem [resolvable:$true] %s220_s11 }
  0x12   : > { %s1930_s9 = scalar_select %p1699_p8, 1, 0 }
  0x13   : > { %p1333_p9 = pneg %p1699_p8  ;;  %s236_s14 = sshll.u32 %s1613_s13, 4  ;;  %s237_s14 = int_to_ptr.vmem [resolvable:$true] %s236_s14 }
  0x14   : > { %s1614_s15 = smov [#allocation8]   ;;  %s1443_s17 = scalar_lea.vmem %s221_s11, 1024 }
  0x15   : > { %p1708_p11 = pnand %p1333_p9, %p1921_p1  ;;  %s252_s16 = sshll.u32 %s1614_s15, 4  ;;  %s253_s16 = int_to_ptr.vmem [resolvable:$true] %s252_s16 }
  0x16   : > { %p1444_p13 = scmp.ne.s32.totalorder %s221_s11, %s1443_s17  ;;  %p1451_p5 = scmp.lt.s32.totalorder %s221_s11, %s221_s11 }
  0x17   : > { %p1434_p12 = pneg %p1708_p11  ;;  %p1452_p7 = scmp.lt.s32.totalorder %s1443_s17, %s1443_s17 }
  0x19   : > { %p1446_p0 = pnand %p1444_p13, %p1434_p12  ;;  %p1453_p9 = por %p1452_p7, %p1451_p5 }
  0x1b   : > { %p1447_p3 = pneg %p1446_p0 }
  0x1d   : > { %p1454_p10 = pnand %p1453_p9, %p1447_p3 }
  0x1f   : > { %1457 = shalt.err (!%p1454_p10)
}
  0x20   : > { %s1922_s18 = smov 64   ;;  %s1923_s19 = smov 4  }
  0x21   : > { %s1932_s1 = sld [smem:[#allocation15_spill]]  ;;  %s1469_s22 = scalar_lea.vmem %s237_s14, 1024 }
  0x22   : > { %p1470_p13 = scmp.ne.s32.totalorder %s237_s14, %s1469_s22  ;;  %p1477_p3 = scmp.lt.s32.totalorder %s237_s14, %s237_s14 }
  0x23   : > { %p1478_p10 = scmp.lt.s32.totalorder %s1469_s22, %s1469_s22 }
  0x24   : > { %p1472_p0 = pnand %p1470_p13, %p1434_p12 }
  0x25   : > { %p1479_p7 = por %p1478_p10, %p1477_p3 }
  0x26   : > { %p1473_p5 = pneg %p1472_p0 }
  0x27   : > { %1336 = dma.hbm_to_vmem [thread:$0]  (!%p1708_p11), %s1932_s1, 1024, %s221_s11, [#allocation6], %s1922_s18, %s1922_s18, %s1923_s19  }
  0x28   : > { %p1480_p9 = pnand %p1479_p7, %p1473_p5 }
  0x2a   : > { %1483 = shalt.err (!%p1480_p9)
}
  0x2b   : > { %1339 = dma.hbm_to_vmem [thread:$0]  (!%p1708_p11), %s1916_s3, 1024, %s237_s14, [#allocation6], %s1922_s18, %s1922_s18, %s1923_s19  }
  0x2c   : > { %s1495_s10 = scalar_lea.vmem %s253_s16, 1024  ;;  %p1503_p3 = scmp.lt.s32.totalorder %s253_s16, %s253_s16 }
  0x2d   : > { %p1496_p1 = scmp.ne.s32.totalorder %s253_s16, %s1495_s10  ;;  %p1504_p5 = scmp.lt.s32.totalorder %s1495_s10, %s1495_s10 }
  0x2f   : > { %p1498_p13 = pnand %p1496_p1, %p1434_p12  ;;  %p1505_p10 = por %p1504_p5, %p1503_p3 }
  0x31   : > { %p1499_p0 = pneg %p1498_p13 }
  0x33   : > { %p1506_p7 = pnand %p1505_p10, %p1499_p0 }
  0x35   : > { %1509 = shalt.err (!%p1506_p7)
}
  0x36   : > { %1342 = dma.hbm_to_vmem [thread:$0]  (!%p1708_p11), %s1918_s5, 1024, %s253_s16, [#allocation9], %s1922_s18, %s1922_s18, %s1923_s19  }
  0x37   : > { %s1748_s14 = sadd.s32 1, %s1610_s27   ;;  %s32_s15 = sadd.s32 1, %s1606_s26 }
  0x38   : > { %s29_s12 = ssub.s32 %s1610_s27, %s1748_s14  ;;  %p39_p12 = scmp.ne.s32.totalorder %s1606_s26, %s1602_s25 }
  0x39   : > { %p30_p1 = scmp.eq.s32.totalorder %s29_s12, 0  ;;  %p40_p9 = scmp.eq.s32.totalorder %s1610_s27, 0 }
  0x3a   : > { %p1354_p13 = scmp.lt.s32.totalorder %s1610_s27, 2  ;;  %p1762_p3 = por %p195_p2, %p39_p12 }
  0x3b   : > { %s1758_s17 = scalar_select %p30_p1, %s1606_s26, %s32_s15  }
  0x3c   : > { %p41_p0 = por %p40_p9, %p39_p12  ;;  %s269_s21 = sand.u32 1, %s1606_s26  }
  0x3d   : > { %s1933_s20 = scalar_select %p1762_p3, 1, 0 }
  0x3e   : > { %s1156_s22 = sshll.u32 %s1610_s27, 10  ;;  %s1110_s16 = sshll.u32 %s269_s21, 6 }
  0x3f   : > { %s1771_s10 = scalar_lea.hbm %s1913_s0, %s1156_s22  ;;  %s273_s11 = scalar_lea.vmem [#allocation2], %s1110_s16 }
  0x40   : > { %s280_s13 = sshll.u32 %s273_s11, 4  ;;  %p1773_p11 = pnand %p1354_p13, %p41_p0  ;;  %s1777_s13 = int_to_ptr.vmem [resolvable:$true] %s280_s13 }
  0x41   : > { %s1779_s15 = scalar_lea.sflag [#allocation3], %s269_s21  ;;  %s1510_s18 = scalar_lea.hbm %s1771_s10, 1024 }
  0x42   : > { %p1511_p2 = scmp.ne.s32.totalorder %s1771_s10, %s1510_s18  ;;  %p1512_p5 = pneg %p1773_p11 }
  0x43   : > { %s1515_s16 = scalar_lea.hbm %s1913_s0, 2048  ;;  %p1516_p1 = scmp.lt.s32.totalorder %s1771_s10, %s1913_s0 }
  0x44   : > { %p1513_p10 = pnand %p1512_p5, %p1511_p2  ;;  %p1517_p12 = scmp.lt.s32.totalorder %s1515_s16, %s1510_s18 }
  0x46   : > { %p1514_p7 = pneg %p1513_p10  ;;  %p1518_p9 = por %p1517_p12, %p1516_p1 }
  0x48   : > { %p1519_p13 = pnand %p1518_p9, %p1514_p7 }
  0x4a   : > { %1522 = shalt.err (!%p1519_p13)
}
  0x4b   : > { %s1523_s21 = scalar_lea.vmem %s1777_s13, 1024  ;;  %s1617_s19 = smov [#allocation2]  }
  0x4c   : > { %p1524_p0 = scmp.ne.s32.totalorder %s1777_s13, %s1523_s21  ;;  %s1528_s1 = sshll.u32 %s1617_s19, 4  ;;  %s1529_s1 = int_to_ptr.vmem [resolvable:$false] %s1528_s1 }
  0x4d   : > { %s1530_s22 = scalar_lea.vmem %s1529_s1, 2048  ;;  %p1531_p10 = scmp.lt.s32.totalorder %s1777_s13, %s1529_s1 }
  0x4e   : > { %p1526_p6 = pnand %p1524_p0, %p1512_p5  ;;  %p1532_p3 = scmp.lt.s32.totalorder %s1530_s22, %s1523_s21 }
  0x50   : > { %p1527_p2 = pneg %p1526_p6  ;;  %p1533_p4 = por %p1532_p3, %p1531_p10 }
  0x52   : > { %p1534_p8 = pnand %p1533_p4, %p1527_p2 }
  0x54   : > { %1537 = shalt.err (!%p1534_p8)
}
  0x55   : > { %s1935_s18 = smov 4   ;;  %s1936_s23 = smov 64  }
  0x56   : > { %1346 = dma.hbm_to_vmem [thread:$0]  (!%p1773_p11), %s1771_s10, 1024, %s1777_s13, %s1779_s15, %s1936_s23, %s1936_s23, %s1935_s18  }
  0x57   : > { %p1937_p6 = scmp.ne.s32.totalorder %s1930_s9, 0 }
  0x58   : > { %s1806_s19 = sand.u32 (!%p1937_p6), 1, %s1602_s25   ;;  %p1938_p4 = scmp.ne.s32.totalorder (!%p1937_p6), %s1928_s30, 0 }
  0x59   : > { %292 = sbr.rel (%p1937_p6) target bundleno = 916 (0x394), region = 48  ;;  %s1114_s1 = sshll.u32 (!%p1937_p6), %s1806_s19, 6 }
  0x5a   : > { %s295_s16 = scalar_lea.sflag (!%p1937_p6), [#allocation3], %s1806_s19  ;;  %s1810_s29 = scalar_lea.vmem (!%p1937_p6), [#allocation2], %s1114_s1 }
  0x5e   : > { %1581 = dma.done.wait (%p1938_p4), %s295_s16, 1024  }
  0x5f   : > { %1583 = vsyncadd (%p1938_p4), %s295_s16, 4294966272  ;;  %p1939_p8 = scmp.eq.s32.totalorder %s1680_s28, 0 }
  0x61   : > { %1585 = dma.done.wait (%p1939_p8), [#allocation6], 2048   ;;  %p1940_p3 = pmov %p1939_p8 }
  0x63   : > { %1587 = vsyncadd (%p1940_p3), [#allocation6], 4294965248  ;;  %p1941_p11 = pmov %p1940_p3 }
  0x64   : > { %p1942_p5 = pmov %p1940_p3 }
  0x65   : > { %1589 = dma.done.wait (%p1941_p11), [#allocation9], 1024  }
  0x66   : > { %1591 = vsyncadd (%p1942_p5), [#allocation9], 4294966272  ;;  %v1396_v0 = vld [vmem:[#allocation5 + $0x38] sm:$0xff]   ;;  %v1397_v1 = vld [vmem:[#allocation5 + $0x30] sm:$0xff]   ;;  %s1153_s11 = sshll.u32 %s1680_s28, 4  ;;  %s339_s21 = scalar_lea.vmem [#allocation10], %s1806_s19 }
  0x67   : > { %1205 = vmatprep.subr.bf16.mxu0 %v1396_v0  ;;  %v1398_v2 = vld [vmem:[#allocation5 + $0x28] sm:$0xff]   ;;  %v1399_v3 = vld [vmem:[#allocation5 + $0x20] sm:$0xff]   ;;  %v1400_v5 = vld [vmem:[#allocation5 + $0x18] sm:$0xff]   ;;  %s1009_s22 = sshll.u32 %s339_s21, 4  ;;  %s1876_s1 = scalar_lea.hbm %s1920_s7, %s1153_s11  ;;  %s1010_s22 = int_to_ptr.vmem [resolvable:$true] %s1009_s22 }
  0x68   : > { %1206 = vmatpush3.bf16.msra.mxu0 %v1396_v0  ;;  %v1404_v4 = vld [vmem:[%s1810_s29] sm:$0xff]   ;;  %v1401_v6 = vld [vmem:[#allocation5 + $0x10] sm:$0xff]   ;;  %v1412_v7 = vld [vmem:[#allocation7 + $0x38] sm:$0xff]   ;;  %s997_s16 = scalar_lea.sflag [#allocation4], %s1806_s19  ;;  %p1943_p1 = scmp.ne.s32.totalorder %s1933_s20, 0 }
  0x69   : > { %1207 = vmatprep.subr.bf16.mxu0 %v1397_v1  ;;  %1221 = vmatprep.mubr.bf16.mxu0 %v1404_v4  ;;  %v1413_v8 = vld [vmem:[#allocation7 + $0x30] sm:$0xff]   ;;  %v1402_v9 = vld [vmem:[#allocation5 + $0x8] sm:$0xff]   ;;  %v1403_v11 = vld [vmem:[#allocation5] sm:$0xff]   ;;  %s1618_s30 = smov [#allocation10]  }
  0x6a   : > { %1237 = vmatprep.subr.bf16.mxu1 %v1412_v7  ;;  %v1414_v10 = vld [vmem:[#allocation7 + $0x28] sm:$0xff]   ;;  %v1415_v12 = vld [vmem:[#allocation7 + $0x20] sm:$0xff]   ;;  %v1416_v13 = vld [vmem:[#allocation7 + $0x18] sm:$0xff]   ;;  %s1542_s9 = sshll.u32 %s1618_s30, 4  ;;  %s1543_s9 = int_to_ptr.vmem [resolvable:$false] %s1542_s9 }
  0x6b   : > { %1238 = vmatpush3.bf16.msra.mxu1 %v1412_v7  ;;  %v1405_v14 = vld [vmem:[%s1810_s29 + $0x8] sm:$0xff]   ;;  %v1406_v15 = vld [vmem:[%s1810_s29 + $0x10] sm:$0xff]   ;;  %v1407_v16 = vld [vmem:[%s1810_s29 + $0x18] sm:$0xff]   ;;  %s1544_s28 = scalar_lea.vmem %s1543_s9, 32  ;;  %p1545_p13 = scmp.lt.s32.totalorder %s1010_s22, %s1543_s9 }
  0x6c   : > { %1208 = vmatpush3.bf16.msra.mxu0 %v1397_v1  ;;  %1239 = vmatprep.subr.bf16.mxu1 %v1413_v8  ;;  %v1408_v17 = vld [vmem:[%s1810_s29 + $0x20] sm:$0xff]   ;;  %v1409_v18 = vld [vmem:[%s1810_s29 + $0x28] sm:$0xff]   ;;  %v1410_v19 = vld [vmem:[%s1810_s29 + $0x30] sm:$0xff]  }
  0x6d   : > { %1209 = vmatprep.subr.bf16.mxu0 %v1398_v2  ;;  %v1411_v20 = vld [vmem:[%s1810_s29 + $0x38] sm:$0xff]   ;;  %v1417_v21 = vld [vmem:[#allocation7 + $0x10] sm:$0xff]   ;;  %v1418_v22 = vld [vmem:[#allocation7 + $0x8] sm:$0xff]   ;;  %s1538_s29 = scalar_lea.vmem %s1010_s22, 16 }
  0x6e   : > { %v1419_v23 = vld [vmem:[#allocation7] sm:$0xff]   ;;  %v1420_v24 = vld [vmem:[#allocation8 + $0x38] sm:$0xff]   ;;  %v1421_v25 = vld [vmem:[#allocation8 + $0x30] sm:$0xff]   ;;  %p1539_p7 = scmp.ne.s32.totalorder %s1010_s22, %s1538_s29  ;;  %p1546_p0 = scmp.lt.s32.totalorder %s1544_s28, %s1538_s29 }
  0x6f   : > { %1240 = vmatpush3.bf16.msra.mxu1 %v1413_v8  ;;  %v1422_v26 = vld [vmem:[#allocation8 + $0x28] sm:$0xff]   ;;  %v1832_v27 = vld [vmem:[#allocation8 + $0x20] sm:$0xff]   ;;  %v1835_v28 = vld [vmem:[#allocation8 + $0x18] sm:$0xff]  }
  0x70   : > { %1210 = vmatpush3.bf16.msra.mxu0 %v1398_v2  ;;  %1241 = vmatprep.subr.bf16.mxu1 %v1414_v10  ;;  %v1843_v31 = vld [vmem:[%s1915_s2] ss:$0 sm:$0xff]  ;;  %p1540_p12 = pnand %p1539_p7, %p1943_p1  ;;  %p1547_p2 = por %p1546_p0, %p1545_p13 }
  0x71   : > { %1211 = vmatprep.subr.bf16.mxu0 %v1399_v3 }
  0x72   : > { %p1541_p9 = pneg %p1540_p12 }
  0x73   : > { %1242 = vmatpush3.bf16.msra.mxu1 %v1414_v10 }
  0x74   : > { %1212 = vmatpush3.bf16.msra.mxu0 %v1399_v3  ;;  %1243 = vmatprep.subr.bf16.mxu1 %v1415_v12  ;;  %p1548_p10 = pnand %p1547_p2, %p1541_p9 }
  0x75   : > { %1213 = vmatprep.subr.bf16.mxu0 %v1400_v5 }
  0x77   : > { %1244 = vmatpush3.bf16.msra.mxu1 %v1415_v12 }
  0x78   : > { %1214 = vmatpush3.bf16.msra.mxu0 %v1400_v5  ;;  %1245 = vmatprep.subr.bf16.mxu1 %v1416_v13 }
  0x79   : > { %1215 = vmatprep.subr.bf16.mxu0 %v1401_v6 }
  0x7b   : > { %1246 = vmatpush3.bf16.msra.mxu1 %v1416_v13 }
  0x7c   : > { %1216 = vmatpush3.bf16.msra.mxu0 %v1401_v6  ;;  %1247 = vmatprep.subr.bf16.mxu1 %v1417_v21 }
  0x7d   : > { %1217 = vmatprep.subr.bf16.mxu0 %v1402_v9 }
  0x7f   : > { %1248 = vmatpush3.bf16.msra.mxu1 %v1417_v21 }
  0x80   : > { %1218 = vmatpush3.bf16.msra.mxu0 %v1402_v9  ;;  %1249 = vmatprep.subr.bf16.mxu1 %v1418_v22 }
  0x81   : > { %1219 = vmatprep.subr.bf16.mxu0 %v1403_v11 }
  0x83   : > { %1250 = vmatpush3.bf16.msra.mxu1 %v1418_v22  ;;  %v1425_v22 = vld [vmem:[#allocation8 + $0x10] sm:$0xff]  }
  0x84   : > { %1220 = vmatpush3.bf16.msra.mxu0 %v1403_v11  ;;  %1251 = vmatprep.subr.bf16.mxu1 %v1419_v23 }
  0x85   : > { %1269 = vmatprep.subr.bf16.mxu0 %v1420_v24 }
  0x87   : > { %1222 = vmatmul.mubr.bf16.vlgmr.msra.gmra.mxu0 %v1405_v14  ;;  %1252 = vmatpush3.bf16.msra.mxu1 %v1419_v23  ;;  %v1426_v23 = vld [vmem:[#allocation8 + $0x8] sm:$0xff]  }
  0x88   : > { %1225 = vmatprep.mubr.bf16.mxu0 %v1406_v15  ;;  %1301 = vmatprep.subr.bf16.mxu1 %v1420_v24 }
  0x89   : > { %1270 = vmatpush3.bf16.msra.mxu0 %v1420_v24 }
  0x8a   : > { %1271 = vmatprep.subr.bf16.mxu0 %v1421_v25 }
  0x8d   : > { %1272 = vmatpush3.bf16.msra.mxu0 %v1421_v25 }
  0x8e   : > { %1273 = vmatprep.subr.bf16.mxu0 %v1422_v26 }
  0x8f   : > { %1226 = vmatmul.mubr.bf16.gmra.mxu0 %v1407_v16 }
  0x90   : > { %1229 = vmatprep.mubr.bf16.mxu0 %v1408_v17 }
  0x91   : > { %1274 = vmatpush3.bf16.msra.mxu0 %v1422_v26 }
  0x92   : > { %1275 = vmatprep.subr.bf16.mxu0 %v1832_v27 }
  0x95   : > { %1276 = vmatpush3.bf16.msra.mxu0 %v1832_v27 }
  0x96   : > { %1277 = vmatprep.subr.bf16.mxu0 %v1835_v28 }
  0x97   : > { %1230 = vmatmul.mubr.bf16.gmra.mxu0 %v1409_v18 }
  0x98   : > { %1233 = vmatprep.mubr.bf16.mxu0 %v1410_v19 }
  0x99   : > { %1278 = vmatpush3.bf16.msra.mxu0 %v1835_v28 }
  0x9a   : > { %1279 = vmatprep.subr.bf16.mxu0 %v1425_v22 }
  0x9d   : > { %1280 = vmatpush3.bf16.msra.mxu0 %v1425_v22 }
  0x9e   : > { %1281 = vmatprep.subr.bf16.mxu0 %v1426_v23 }
  0x9f   : > { %1234 = vmatmul.mubr.bf16.gmra.mxu0 %v1411_v20 }
  0xa1   : > { %1282 = vmatpush3.bf16.msra.mxu0 %v1426_v23 }
 0x147   : > { %v1223_v29 = vpop.f32.mrf.mxu0 }
 0x148   : > { %v520_v35 = vadd.f32 %v1223_v29, %v1843_v31 }
 0x149   : > { %v511_v30 = vpop.f32.mrf.mxu0 }
 0x14a   : > { %v512_v33 = vadd.f32 %v1843_v31, %v511_v30  ;;  %v576_v42 = vmax.f32 %v520_v35, 0.0 }
 0x14b   : > { %v1224_v32 = vpop.f32.mrf.mxu0 }
 0x14c   : > { %v523_v34 = vadd.f32 %v1224_v32, %v1843_v31  ;;  %v574_v40 = vmax.f32 %v512_v33, 0.0 }
 0x14d   : > { %v514_v36 = vpop.f32.mrf.mxu0 }
 0x14e   : > { %v515_v37 = vadd.f32 %v1843_v31, %v514_v36  ;;  %v577_v38 = vmax.f32 %v523_v34, 0.0 }
 0x14f   : > { %v1227_v39 = vpop.f32.mrf.mxu0 }
 0x150   : > { %v575_v41 = vmax.f32 %v515_v37, 0.0  ;;  %v536_v43 = vadd.f32 %v1227_v39, %v1843_v31  ;;  %v591_v47 = vpack.c.bf16 %v577_v38, %v576_v42 }
 0x151   : > { %v527_v44 = vpop.f32.mrf.mxu0 }
 0x152   : > { %v528_v45 = vadd.f32 %v1843_v31, %v527_v44  ;;  %v590_v46 = vpack.c.bf16 %v575_v41, %v574_v40  ;;  %v580_v50 = vmax.f32 %v536_v43, 0.0 }
 0x153   : > { %v1228_v48 = vpop.f32.mrf.mxu0 }
 0x154   : > { %v539_v49 = vadd.f32 %v1228_v48, %v1843_v31  ;;  %1253 = vmatprep.mubr.bf16.mxu1 %v590_v46  ;;  %v578_v52 = vmax.f32 %v528_v45, 0.0 }
 0x155   : > { %v530_v51 = vpop.f32.mrf.mxu0  ;;  %1254 = vmatmul.mubr.bf16.vlgmr.msra.gmra.mxu1 %v591_v47 }
 0x156   : > { %v581_v53 = vmax.f32 %v539_v49, 0.0  ;;  %v531_v54 = vadd.f32 %v1843_v31, %v530_v51  ;;  %1309 = vmatpush3.bf16.msra.mxu1 %v1420_v24  ;;  %v1427_v24 = vld [vmem:[#allocation8] sm:$0xff]  }
 0x157   : > { %v1231_v55 = vpop.f32.mrf.mxu0  ;;  %1302 = vmatprep.subr.bf16.mxu1 %v1421_v25  ;;  %1283 = vmatprep.subr.bf16.mxu0 %v1427_v24 }
 0x158   : > { %v579_v56 = vmax.f32 %v531_v54, 0.0  ;;  %v593_v57 = vpack.c.bf16 %v581_v53, %v580_v50  ;;  %v552_v58 = vadd.f32 %v1231_v55, %v1843_v31  ;;  %1284 = vmatpush3.bf16.msra.mxu0 %v1427_v24 }
 0x159   : > { %v543_v59 = vpop.f32.mrf.mxu0 }
 0x15a   : > { %v592_v60 = vpack.c.bf16 %v579_v56, %v578_v52  ;;  %v544_v61 = vadd.f32 %v1843_v31, %v543_v59  ;;  %1310 = vmatpush3.bf16.msra.mxu1 %v1421_v25  ;;  %v584_v0 = vmax.f32 %v552_v58, 0.0 }
 0x15b   : > { %v1232_v62 = vpop.f32.mrf.mxu0  ;;  %1303 = vmatprep.subr.bf16.mxu1 %v1422_v26 }
 0x15c   : > { %v555_v63 = vadd.f32 %v1232_v62, %v1843_v31  ;;  %1257 = vmatprep.mubr.bf16.mxu1 %v592_v60  ;;  %v582_v2 = vmax.f32 %v544_v61, 0.0 }
 0x15d   : > { %v546_v1 = vpop.f32.mrf.mxu0  ;;  %1258 = vmatmul.mubr.bf16.gmra.mxu1 %v593_v57 }
 0x15e   : > { %v585_v3 = vmax.f32 %v555_v63, 0.0  ;;  %v547_v4 = vadd.f32 %v1843_v31, %v546_v1  ;;  %1311 = vmatpush3.bf16.msra.mxu1 %v1422_v26 }
 0x15f   : > { %v1235_v5 = vpop.f32.mrf.mxu0  ;;  %1304 = vmatprep.subr.bf16.mxu1 %v1832_v27 }
 0x160   : > { %v583_v6 = vmax.f32 %v547_v4, 0.0  ;;  %v595_v7 = vpack.c.bf16 %v585_v3, %v584_v0  ;;  %v568_v8 = vadd.f32 %v1235_v5, %v1843_v31 }
 0x161   : > { %v559_v9 = vpop.f32.mrf.mxu0 }
 0x162   : > { %v594_v10 = vpack.c.bf16 %v583_v6, %v582_v2  ;;  %v560_v11 = vadd.f32 %v1843_v31, %v559_v9  ;;  %1312 = vmatpush3.bf16.msra.mxu1 %v1832_v27  ;;  %v588_v14 = vmax.f32 %v568_v8, 0.0  ;;  %v1135_v27 = vld [vmem:[%s1917_s4] ss:$0 sm:$0xff] }
 0x163   : > { %v1236_v12 = vpop.f32.mrf.mxu0  ;;  %1305 = vmatprep.subr.bf16.mxu1 %v1835_v28 }
 0x164   : > { %1261 = vmatprep.mubr.bf16.mxu1 %v594_v10  ;;  %v571_v13 = vadd.f32 %v1236_v12, %v1843_v31  ;;  %v586_v16 = vmax.f32 %v560_v11, 0.0 }
 0x165   : > { %1262 = vmatmul.mubr.bf16.gmra.mxu1 %v595_v7  ;;  %v562_v15 = vpop.f32.mrf.mxu0 }
 0x166   : > { %v589_v17 = vmax.f32 %v571_v13, 0.0  ;;  %v563_v18 = vadd.f32 %v1843_v31, %v562_v15  ;;  %1313 = vmatpush3.bf16.msra.mxu1 %v1835_v28 }
 0x167   : > { %1306 = vmatprep.subr.bf16.mxu1 %v1425_v22 }
 0x168   : > { %v587_v19 = vmax.f32 %v563_v18, 0.0  ;;  %v597_v20 = vpack.c.bf16 %v589_v17, %v588_v14 }
 0x16a   : > { %v596_v21 = vpack.c.bf16 %v587_v19, %v586_v16  ;;  %1314 = vmatpush3.bf16.msra.mxu1 %v1425_v22  ;;  %v1144_v19 = vld [vmem:[%s1919_s6] ss:$0 sm:$0xff] }
 0x16b   : > { %1307 = vmatprep.subr.bf16.mxu1 %v1426_v23 }
 0x16c   : > { %1265 = vmatprep.mubr.bf16.mxu1 %v596_v21 }
 0x16d   : > { %1266 = vmatmul.mubr.bf16.gmra.mxu1 %v597_v20 }
 0x16e   : > { %1315 = vmatpush3.bf16.msra.mxu1 %v1426_v23 }
 0x16f   : > { %1308 = vmatprep.subr.bf16.mxu1 %v1427_v24 }
 0x172   : > { %1316 = vmatpush3.bf16.msra.mxu1 %v1427_v24 }
 0x215   : > { %v1255_v25 = vpop.f32.mrf.mxu1 }
 0x216   : > { %v712_v31 = vadd.f32 %v1255_v25, %v1135_v27 }
 0x217   : > { %v703_v26 = vpop.f32.mrf.mxu1 }
 0x218   : > { %v704_v29 = vadd.f32 %v1135_v27, %v703_v26  ;;  %v768_v38 = vmax.f32 %v712_v31, 0.0 }
 0x219   : > { %v1256_v28 = vpop.f32.mrf.mxu1 }
 0x21a   : > { %v715_v30 = vadd.f32 %v1256_v28, %v1135_v27  ;;  %v766_v36 = vmax.f32 %v704_v29, 0.0 }
 0x21b   : > { %v706_v32 = vpop.f32.mrf.mxu1 }
 0x21c   : > { %v707_v33 = vadd.f32 %v1135_v27, %v706_v32  ;;  %v769_v34 = vmax.f32 %v715_v30, 0.0 }
 0x21d   : > { %v1259_v35 = vpop.f32.mrf.mxu1 }
 0x21e   : > { %v767_v37 = vmax.f32 %v707_v33, 0.0  ;;  %v783_v41 = vpack.c.bf16 %v769_v34, %v768_v38  ;;  %v728_v45 = vadd.f32 %v1259_v35, %v1135_v27 }
 0x21f   : > { %v719_v39 = vpop.f32.mrf.mxu1 }
 0x220   : > { %v782_v40 = vpack.c.bf16 %v767_v37, %v766_v36  ;;  %v720_v43 = vadd.f32 %v1135_v27, %v719_v39  ;;  %v772_v52 = vmax.f32 %v728_v45, 0.0 }
 0x221   : > { %v1260_v42 = vpop.f32.mrf.mxu1 }
 0x222   : > { %v731_v44 = vadd.f32 %v1260_v42, %v1135_v27  ;;  %1285 = vmatprep.mubr.bf16.mxu0 %v782_v40  ;;  %v770_v50 = vmax.f32 %v720_v43, 0.0 }
 0x223   : > { %v722_v46 = vpop.f32.mrf.mxu1  ;;  %1286 = vmatmul.mubr.bf16.vlgmr.msra.gmra.mxu0 %v783_v41 }
 0x224   : > { %v723_v47 = vadd.f32 %v1135_v27, %v722_v46  ;;  %v773_v48 = vmax.f32 %v731_v44, 0.0 }
 0x225   : > { %v1263_v49 = vpop.f32.mrf.mxu1 }
 0x226   : > { %v771_v51 = vmax.f32 %v723_v47, 0.0  ;;  %v744_v53 = vadd.f32 %v1263_v49, %v1135_v27  ;;  %v785_v57 = vpack.c.bf16 %v773_v48, %v772_v52 }
 0x227   : > { %v735_v54 = vpop.f32.mrf.mxu1 }
 0x228   : > { %v784_v55 = vpack.c.bf16 %v771_v51, %v770_v50  ;;  %v736_v56 = vadd.f32 %v1135_v27, %v735_v54  ;;  %v776_v60 = vmax.f32 %v744_v53, 0.0 }
 0x229   : > { %v1264_v58 = vpop.f32.mrf.mxu1 }
 0x22a   : > { %v747_v59 = vadd.f32 %v1264_v58, %v1135_v27  ;;  %1289 = vmatprep.mubr.bf16.mxu0 %v784_v55  ;;  %v774_v62 = vmax.f32 %v736_v56, 0.0 }
 0x22b   : > { %v738_v61 = vpop.f32.mrf.mxu1  ;;  %1290 = vmatmul.mubr.bf16.gmra.mxu0 %v785_v57 }
 0x22c   : > { %v777_v63 = vmax.f32 %v747_v59, 0.0  ;;  %v739_v0 = vadd.f32 %v1135_v27, %v738_v61 }
 0x22d   : > { %v1267_v1 = vpop.f32.mrf.mxu1 }
 0x22e   : > { %v775_v2 = vmax.f32 %v739_v0, 0.0  ;;  %v787_v3 = vpack.c.bf16 %v777_v63, %v776_v60  ;;  %v760_v4 = vadd.f32 %v1267_v1, %v1135_v27 }
 0x22f   : > { %v751_v5 = vpop.f32.mrf.mxu1 }
 0x230   : > { %v786_v6 = vpack.c.bf16 %v775_v2, %v774_v62  ;;  %v752_v7 = vadd.f32 %v1135_v27, %v751_v5  ;;  %v780_v10 = vmax.f32 %v760_v4, 0.0 }
 0x231   : > { %v1268_v8 = vpop.f32.mrf.mxu1 }
 0x232   : > { %1293 = vmatprep.mubr.bf16.mxu1 %v786_v6  ;;  %v763_v9 = vadd.f32 %v1268_v8, %v1135_v27  ;;  %v778_v12 = vmax.f32 %v752_v7, 0.0 }
 0x233   : > { %1294 = vmatmul.mubr.bf16.vlgmr.msra.gmra.mxu1 %v787_v3  ;;  %v754_v11 = vpop.f32.mrf.mxu1 }
 0x234   : > { %v781_v13 = vmax.f32 %v763_v9, 0.0  ;;  %v755_v14 = vadd.f32 %v1135_v27, %v754_v11 }
 0x236   : > { %v779_v15 = vmax.f32 %v755_v14, 0.0  ;;  %v789_v16 = vpack.c.bf16 %v781_v13, %v780_v10 }
 0x238   : > { %v788_v17 = vpack.c.bf16 %v779_v15, %v778_v12 }
 0x23a   : > { %1297 = vmatprep.mubr.bf16.mxu1 %v788_v17 }
 0x23b   : > { %1298 = vmatmul.mubr.bf16.gmra.mxu1 %v789_v16 }
 0x2e3   : > { %v1287_v18 = vpop.f32.mrf.mxu0 }
 0x2e4   : > { %v904_v26 = vadd.f32 %v1287_v18, %v1144_v19 }
 0x2e5   : > { %v895_v20 = vpop.f32.mrf.mxu0 }
 0x2e6   : > { %v896_v21 = vadd.f32 %v1144_v19, %v895_v20 }
 0x2e7   : > { %v1288_v22 = vpop.f32.mrf.mxu0 }
 0x2e8   : > { %958 = vxpose.xlu0.b32.start [1/16] (narrow) %v896_v21, 8  ;;  %v907_v28 = vadd.f32 %v1288_v22, %v1144_v19 }
 0x2e9   : > { %v898_v23 = vpop.f32.mrf.mxu0 }
 0x2ea   : > { %v899_v24 = vadd.f32 %v1144_v19, %v898_v23 }
 0x2eb   : > { %v1291_v25 = vpop.f32.mrf.mxu0 }
 0x2ec   : > { %959 = vxpose.xlu0.b32.cont [2/16] (narrow) %v899_v24, 8  ;;  %v920_v34 = vadd.f32 %v1291_v25, %v1144_v19 }
 0x2ed   : > { %v911_v27 = vpop.f32.mrf.mxu0 }
 0x2ee   : > { %v912_v30 = vadd.f32 %v1144_v19, %v911_v27 }
 0x2ef   : > { %v1292_v29 = vpop.f32.mrf.mxu0 }
 0x2f0   : > { %960 = vxpose.xlu0.b32.cont [3/16] (narrow) %v904_v26, 8  ;;  %v923_v36 = vadd.f32 %v1292_v29, %v1144_v19 }
 0x2f1   : > { %v914_v31 = vpop.f32.mrf.mxu0 }
 0x2f2   : > { %v915_v32 = vadd.f32 %v1144_v19, %v914_v31 }
 0x2f3   : > { %v1295_v33 = vpop.f32.mrf.mxu1 }
 0x2f4   : > { %961 = vxpose.xlu0.b32.cont [4/16] (narrow) %v907_v28, 8  ;;  %v936_v42 = vadd.f32 %v1295_v33, %v1144_v19 }
 0x2f5   : > { %v927_v35 = vpop.f32.mrf.mxu1 }
 0x2f6   : > { %v928_v38 = vadd.f32 %v1144_v19, %v927_v35 }
 0x2f7   : > { %v1296_v37 = vpop.f32.mrf.mxu1 }
 0x2f8   : > { %962 = vxpose.xlu0.b32.cont [5/16] (narrow) %v912_v30, 8  ;;  %v939_v44 = vadd.f32 %v1296_v37, %v1144_v19 }
 0x2f9   : > { %v930_v39 = vpop.f32.mrf.mxu1 }
 0x2fa   : > { %v931_v40 = vadd.f32 %v1144_v19, %v930_v39 }
 0x2fb   : > { %v1299_v41 = vpop.f32.mrf.mxu1 }
 0x2fc   : > { %963 = vxpose.xlu0.b32.cont [6/16] (narrow) %v915_v32, 8  ;;  %v952_v49 = vadd.f32 %v1299_v41, %v1144_v19 }
 0x2fd   : > { %v943_v43 = vpop.f32.mrf.mxu1 }
 0x2fe   : > { %v944_v46 = vadd.f32 %v1144_v19, %v943_v43 }
 0x2ff   : > { %v1300_v45 = vpop.f32.mrf.mxu1 }
 0x300   : > { %964 = vxpose.xlu0.b32.cont [7/16] (narrow) %v920_v34, 8  ;;  %v955_v50 = vadd.f32 %v1300_v45, %v1144_v19 }
 0x301   : > { %v946_v47 = vpop.f32.mrf.mxu1 }
 0x302   : > { %v947_v48 = vadd.f32 %v1144_v19, %v946_v47 }
 0x304   : > { %965 = vxpose.xlu0.b32.cont [8/16] (narrow) %v923_v36, 8 }
 0x308   : > { %966 = vxpose.xlu0.b32.cont [9/16] (narrow) %v928_v38, 8 }
 0x30c   : > { %967 = vxpose.xlu0.b32.cont [10/16] (narrow) %v931_v40, 8 }
 0x310   : > { %968 = vxpose.xlu0.b32.cont [11/16] (narrow) %v936_v42, 8 }
 0x314   : > { %969 = vxpose.xlu0.b32.cont [12/16] (narrow) %v939_v44, 8 }
 0x318   : > { %970 = vxpose.xlu0.b32.cont [13/16] (narrow) %v944_v46, 8 }
 0x31c   : > { %971 = vxpose.xlu0.b32.cont [14/16] (narrow) %v947_v48, 8 }
 0x320   : > { %972 = vxpose.xlu0.b32.cont [15/16] (narrow) %v952_v49, 8 }
 0x324   : > { %973 = vxpose.xlu0.b32.end [16/16] (narrow) %v955_v50, 8 }
 0x364   : > { %v974_v51 = vpop.trf.xlu0 }
 0x365   : > { %v990_v52 = vsub.f32 0.0, %v974_v51 }
 0x367   : > { %v991_v53 = vmul.f32 1.442695, %v990_v52 }
 0x369   : > { %1428 = vpow2.f32 %v991_v53 }
 0x376   : > { %v1429_v54 = vpop.eup %1428 }
 0x377   : > { %v993_v55 = vadd.f32 1.0, %v1429_v54 }
 0x379   : > { %1430 = vrcp.f32 %v993_v55 }
 0x386   : > { %v1431_v56 = vpop.eup %1430 }
 0x387   : > { %995 = vst [vmem:[%s339_s21] sm:$0x1] %v1431_v56 }
 0x388   : > { %1551 = shalt.err (!%p1548_p10)
}
 0x389   : > { %s1552_s10 = scalar_lea.hbm %s1876_s1, 16  ;;  %s1556_s12 = scalar_lea.hbm %s1920_s7, 32 }
 0x38a   : > { %p1553_p6 = scmp.ne.s32.totalorder %s1876_s1, %s1552_s10  ;;  %p1557_p3 = scmp.lt.s32.totalorder %s1876_s1, %s1920_s7 }
 0x38b   : > { %p1558_p11 = scmp.lt.s32.totalorder %s1556_s12, %s1552_s10 }
 0x38c   : > { %p1554_p4 = pnand %p1553_p6, %p1943_p1 }
 0x38d   : > { %p1559_p5 = por %p1558_p11, %p1557_p3 }
 0x38e   : > { %p1555_p8 = pneg %p1554_p4 }
 0x390   : > { %p1560_p7 = pnand %p1559_p5, %p1555_p8 }
 0x392   : > { %1563 = shalt.err (!%p1560_p7)
}
 0x393   : > { %1331 = dma.vmem_to_hbm [thread:$0]  (%p1943_p1), %s1010_s22, 16, %s1876_s1, %s997_s16  }
 0x394 PF: > { %s1021_s21 = sand.u32 1, %s1598_s24   ;;  %p1944_p12 = scmp.ne.s32.totalorder %s1929_s8, 0 }
 0x395   : > { %p1945_p9 = scmp.ge.s32.totalorder %s1610_s27, 2  ;;  %s1022_s18 = scalar_lea.sflag [#allocation4], %s1021_s21 }
 0x397   : > { %p1348_p13 = pnand %p1945_p9, %p1944_p12 }
 0x399   : > { %p1349_p0 = pneg %p1348_p13 }
 0x39b   : > { %1593 = dma.done.wait (%p1349_p0), %s1022_s18, 16  }
 0x39c   : > { %1595 = vsyncadd (%p1349_p0), %s1022_s18, 4294967280  ;;  %p22_p2 = scmp.ge.s32.totalorder %s1748_s14, 4   ;;  %s1946_s24 = smov %s1602_s25 }
 0x39d   : > { %s1947_s25 = smov %s1606_s26  ;;  %s1948_s26 = smov %s1758_s17 }
 0x39e   : > { %s1949_s27 = smov %s1748_s14  ;;  %24 = sbr.rel (!%p22_p2) target bundleno = 9 (0x9), region = 105 }
 0x3a3   :  { %1026 = vsyncpa [#allocation3], 1 }
 0x3a4   :  { %1028 = vsyncpa [#allocation3 + $0x1], 1 }
 0x3a5   :  { %1029 = vsyncpa [#allocation6], 1 }
 0x3a6   :  { %1030 = vsyncpa [#allocation9], 1 }
 0x3a7   :  { %1031 = vsyncpa [#allocation4], 1 }
 0x3a8   :  { %1033 = vsyncpa [#allocation4 + $0x1], 1 }

</bundles_post_ra>
